<compile_context>
chip_gen: v5e
topology: v5e:2x2
jax: 0.10.0
libtpu: 0.0.40
codegen_flags: <defaults>
</compile_context>

<pallas_src>
from collections import namedtuple
from functools import partial

import jax
import jax.numpy as jnp
import numpy as np
from jax import lax
from jax.experimental import pallas as pl
from jax.experimental.pallas import tpu as pltpu

Genotype = namedtuple("Genotype", ["normal", "normal_concat"])

# 5 edges -> steps = 3; indices valid w.r.t. the growing `states` list.
GENOTYPE = Genotype(
    normal=[
        ("conv_3x3", 0),                       # step 0: s1 = conv(s0)
        ("skip_connect", 0), ("conv_3x3", 1),  # step 1: s2 = s0 + conv(s1)
        ("conv_3x3", 1), ("skip_connect", 2),  # step 2: s3 = conv(s1) + s2
    ],
    normal_concat=[1, 2, 3],
)


# ----------------------------------------------------------------------------
# pltpu.roll convention probe (one tiny compiled kernel, cached per process).
# Kept as a compiled-device probe (not interpret mode) so the direction is
# guaranteed to match the lowering used by the fused kernel; one-time cost.
# ----------------------------------------------------------------------------
_ROLL_IS_NUMPY = None


def _roll_probe_kernel(x_ref, o_ref):
    o_ref[...] = pltpu.roll(x_ref[...], 1, axis=1)


def _roll_convention_is_numpy():
    """True iff pltpu.roll(x, k, axis) == jnp.roll(x, k, axis) on this backend."""
    global _ROLL_IS_NUMPY
    if _ROLL_IS_NUMPY is None:
        x = jnp.arange(8 * 128, dtype=jnp.float32).reshape(8, 128)
        y = pl.pallas_call(
            _roll_probe_kernel,
            out_shape=jax.ShapeDtypeStruct((8, 128), jnp.float32),
        )(x)
        y = np.asarray(jax.block_until_ready(y))
        _ROLL_IS_NUMPY = bool(y[0, 1] == 0.0)  # np.roll puts x[0,0] at [0,1]
    return _ROLL_IS_NUMPY


# ----------------------------------------------------------------------------
# Host-side tap plan (roll amounts) and per-image halo masks.
# Tap t = dh*3+dw reads source pixel (h+dh-1, w+dw-1); OOB sources are zeroed.
# ----------------------------------------------------------------------------
def _build_tap_plan(W, L, roll_is_numpy):
    plan = []
    for dh in range(3):
        for dw in range(3):
            sh, sw = dh - 1, dw - 1
            shift = sh * W + sw            # result[:, p] = x[:, p + shift]
            needs_mask = not (sh == 0 and sw == 0)
            if shift == 0:
                amt = None
            else:
                amt = (-shift) % L if roll_is_numpy else shift % L
            plan.append((amt, needs_mask))
    return tuple(plan)


def _build_tap_masks(H, W, imgs):
    HW = H * W
    pos = np.arange(imgs * HW)
    hh = (pos % HW) // W
    ww = pos % W
    masks = np.ones((9, 1, imgs * HW), np.float32)
    t = 0
    for dh in range(3):
        for dw in range(3):
            sh, sw = dh - 1, dw - 1
            ok = np.ones(imgs * HW, bool)
            if sh < 0:
                ok &= hh >= -sh
            elif sh > 0:
                ok &= hh < H - sh
            if sw < 0:
                ok &= ww >= -sw
            elif sw > 0:
                ok &= ww < W - sw
            masks[t, 0] = ok.astype(np.float32)
            t += 1
    return masks


# ----------------------------------------------------------------------------
# Fused cell kernel.
# Layouts: x_ref (C, L) f32 (L = imgs_per_block * H * W),
#          w_ref (n_conv*C, 9C) bf16 (conv edges grouped by source state),
#          b_ref (n_conv*C, 1) f32, mask_ref (9, 1, L) f32, o_ref (C, L) f32,
#          slab_ref (9C, L) bf16 VMEM scratch (shared 9-tap activation slab).
# ----------------------------------------------------------------------------
def _cell_kernel(x_ref, w_ref, b_ref, mask_ref, o_ref, slab_ref, *,
                 C, op_names, indices, groups, tap_plan):
    group_map = {src: (off, edges) for src, off, edges in groups}
    conv_out = {}

    def compute_group(src_state, row_off, edges):
        # Build the 9-tap ReLU slab ONCE for this source state (f32 elementwise,
        # bf16 only at the slab write), then one stacked MXU matmul for all
        # conv edges consuming it.
        xr = jnp.maximum(src_state, 0.0)                       # (C, L) f32
        for t, (amt, needs_mask) in enumerate(tap_plan):
            tap = xr if amt is None else pltpu.roll(xr, amt, axis=1)
            if needs_mask:
                tap = tap * mask_ref[t]                        # (C,L) * (1,L)
            slab_ref[t * C:(t + 1) * C, :] = tap.astype(slab_ref.dtype)
        rows = len(edges) * C
        acc = jnp.dot(w_ref[row_off:row_off + rows, :], slab_ref[...],
                      preferred_element_type=jnp.float32)      # (rows, L) f32
        acc = acc + b_ref[row_off:row_off + rows, :]
        for k, e in enumerate(edges):
            conv_out[e] = acc[k * C:(k + 1) * C, :]            # sublane-aligned

    def maybe_group(state_idx, states):
        if state_idx in group_map:
            off, edges = group_map[state_idx]
            compute_group(states[state_idx], off, edges)

    def edge_val(edge, states):
        if op_names[edge] == "skip_connect":
            return states[indices[edge]]
        return conv_out[edge]

    states = [x_ref[...].astype(jnp.float32)]
    maybe_group(0, states)
    steps = (len(op_names) + 1) // 2
    for i in range(steps):
        if i == 0:
            s = edge_val(0, states)                            # h2 == 0 in spec
        else:
            s = edge_val(2 * i - 1, states) + edge_val(2 * i, states)
        states.append(s)
        maybe_group(i + 1, states)

    o_ref[...] = states[-1].astype(o_ref.dtype)                # lane-dense store


# ----------------------------------------------------------------------------
# Wrapper: eval-mode Cell.forward.
# ----------------------------------------------------------------------------
def _images_per_block(B):
    """B images per block (grid=1) on single-TC chips; 1 per block on v7x."""
    try:
        kind = jax.devices()[0].device_kind.lower()
    except Exception:
        kind = ""
    if B > 1 and ("v7" in kind or "7x" in kind):
        return 1          # feed both v7x TensorCores via grid=(B,) "parallel"
    return B              # v5e/v6e: one grid step, N = B*HW lanes per matmul


def cell_forward(x_nchw, params, genotype, drop_prob=0.0):
    """Eval-mode forward of `Cell` (drop_path never fires in eval)."""
    del drop_prob
    op_names, indices = zip(*genotype.normal)
    B, C, H, W = x_nchw.shape
    HW = H * W

    ipb = _images_per_block(B)
    L = ipb * HW

    # Group conv edges by the state index they consume -> one stacked matmul
    # per group (edges 2 & 3 share states[1] in this genotype).
    groups_by_src = {}
    for e, name in enumerate(op_names):
        if name != "skip_connect":
            groups_by_src.setdefault(indices[e], []).append(e)

    w_rows, b_rows, groups = [], [], []
    off = 0
    for src in sorted(groups_by_src):
        edges = groups_by_src[src]
        for e in edges:
            w, b = params[e]                         # (Cout, Cin, 3, 3) OIHW
            # Column block (dh*3+dw)*C + c_in  <->  weight[:, c_in, dh, dw].
            w_rows.append(jnp.transpose(w, (0, 2, 3, 1)).reshape(C, 9 * C))
            b_rows.append(b[:, None])
        groups.append((src, off, tuple(edges)))
        off += len(edges) * C

    if w_rows:
        w_all = jnp.concatenate(w_rows, axis=0).astype(jnp.bfloat16)  # (nC, 9C)
        b_all = jnp.concatenate(b_rows, axis=0).astype(jnp.float32)   # (nC, 1)
    else:  # degenerate all-skip genotype: dummy (never indexed) operands
        w_all = jnp.zeros((C, 9 * C), jnp.bfloat16)
        b_all = jnp.zeros((C, 1), jnp.float32)
    n_rows = w_all.shape[0]

    masks = jnp.asarray(_build_tap_masks(H, W, ipb))                  # (9,1,L)
    tap_plan = _build_tap_plan(W, L, _roll_convention_is_numpy())

    # Channels-major with batch folded into the lane axis: (C, B*HW).
    x_cl = jnp.transpose(x_nchw.reshape(B, C, HW), (1, 0, 2)).reshape(C, B * HW)

    kernel = partial(_cell_kernel, C=C, op_names=op_names, indices=indices,
                     groups=tuple(groups), tap_plan=tap_plan)

    out = pl.pallas_call(
        kernel,
        out_shape=jax.ShapeDtypeStruct((C, B * HW), x_nchw.dtype),
        grid_spec=pltpu.PrefetchScalarGridSpec(
            num_scalar_prefetch=0,
            grid=(B // ipb,),
            in_specs=[
                pl.BlockSpec((C, L), lambda g: (0, g)),
                pl.BlockSpec((n_rows, 9 * C), lambda g: (0, 0)),
                pl.BlockSpec((n_rows, 1), lambda g: (0, 0)),
                pl.BlockSpec((9, 1, L), lambda g: (0, 0, 0)),
            ],
            out_specs=pl.BlockSpec((C, L), lambda g: (0, g)),
            scratch_shapes=[pltpu.VMEM((9 * C, L), jnp.bfloat16)],
        ),
        compiler_params=pltpu.CompilerParams(
            dimension_semantics=("parallel",)),
    )(x_cl, w_all, b_all, masks)

    return out.reshape(C, B, HW).transpose(1, 0, 2).reshape(B, C, H, W)


# ----------------------------------------------------------------------------
# Parameters (PyTorch-layout OIHW weights) and a pure-JAX reference.
# NOTE: the kernel computes the conv matmul in bf16 with f32 accumulation; the
# reference quantizes identically, so the check validates structure.  Against
# a true f32 PyTorch Cell the error would be bf16-sized, not 2e-3-tight.
# ----------------------------------------------------------------------------
def make_cell_params(genotype, C, key):
    op_names, _ = zip(*genotype.normal)
    params = {}
    for i, name in enumerate(op_names):
        if name != "skip_connect":
            key, wk = jax.random.split(key)
            fan_in = 3 * 3 * C
            w = jax.random.normal(wk, (C, C, 3, 3), jnp.float32) / np.sqrt(fan_in)
            b = jnp.full((C,), 0.01 * (i + 1), jnp.float32)
            params[i] = (w, b)
    return params


def _ref_relu_conv3x3(x_nchw, w_oihw, b):
    xq = jnp.maximum(x_nchw, 0.0).astype(jnp.bfloat16).astype(jnp.float32)
    wq = w_oihw.astype(jnp.bfloat16).astype(jnp.float32)
    y = lax.conv_general_dilated(
        xq, wq, window_strides=(1, 1), padding="SAME",
        dimension_numbers=("NCHW", "OIHW", "NCHW"))
    return y + b[None, :, None, None]


def cell_forward_ref(x_nchw, params, genotype):
    op_names, indices = zip(*genotype.normal)
    steps = (len(op_names) + 1) // 2

    def apply_op(edge, h):
        if op_names[edge] == "skip_connect":
            return h
        w, b = params[edge]
        return _ref_relu_conv3x3(h, w, b)

    states = [x_nchw]
    for i in range(steps):
        if i == 0:
            s = apply_op(0, states[indices[0]])
        else:
            s = (apply_op(2 * i - 1, states[indices[2 * i - 1]])
                 + apply_op(2 * i, states[indices[2 * i]]))
        states.append(s)
    return states[-1]


# ----------------------------------------------------------------------------
if __name__ == "__main__":
    B, C, H, W = 2, 16, 16, 16
    key = jax.random.PRNGKey(0)
    key, xk, pk = jax.random.split(key, 3)

    x = jax.random.normal(xk, (B, C, H, W), jnp.float32)   # NCHW, like PyTorch
    params = make_cell_params(GENOTYPE, C, pk)

    out = jax.block_until_ready(cell_forward(x, params, GENOTYPE, drop_prob=0.0))
    ref = jax.block_until_ready(cell_forward_ref(x, params, GENOTYPE))

    assert out.shape == (B, C, H, W), out.shape
    np.testing.assert_allclose(np.asarray(out), np.asarray(ref),
                               rtol=2e-3, atol=2e-3)
    print("KERNEL_OK")
</pallas_src>

<mosaic_0001>
module attributes {stable_mosaic.version = 11 : i64} {
  func.func @_roll_probe_kernel(%arg0: memref<8x128xf32, #tpu.memory_space<vmem>>, %arg1: memref<8x128xf32, #tpu.memory_space<vmem>>) attributes {dimension_semantics = [], scalar_prefetch = 0 : i64, scratch_operands = 0 : i64, tpu.core_type = #tpu.core_type<tc>} {
    %c0 = arith.constant 0 : index
    %c0_0 = arith.constant 0 : index
    %0 = vector.load %arg0[%c0, %c0_0] : memref<8x128xf32, #tpu.memory_space<vmem>>, vector<8x128xf32>
    %c1_i32 = arith.constant 1 : i32
    %1 = tpu.dynamic_rotate %0 by %c1_i32 dim 1 : vector<8x128xf32>, i32 -> vector<8x128xf32>
    %c0_1 = arith.constant 0 : index
    %c0_2 = arith.constant 0 : index
    %2 = vector.load %arg1[%c0_1, %c0_2] : memref<8x128xf32, #tpu.memory_space<vmem>>, vector<8x128xf32>
    tpu.vector_store %arg1[%c0_1, %c0_2], %1 {strides = array<i32>} : memref<8x128xf32, #tpu.memory_space<vmem>>, vector<8x128xf32>,
    return
  }
}

</mosaic_0001>

<bundles_post_ra>
// kernel: tpu_custom_call.1
= control target key start
LH: loop header
LB: loop body
LE: loop exit
PB: predicated region body
PF: predicated region fallthrough
CT: control target
= control target key end

     0   :  { %6 = vsyncpa [#allocation3], 0  ;;  %s118_s0 = inlined_call_operand.hbm [shape: f32[8,128], index: 0, kind: input, shape index: {}]   ;;  %s119_s1 = inlined_call_operand.hbm [shape: f32[8,128], index: 1, kind: output, shape index: {}]  }
   0x1   :  { %7 = vsyncpa [#allocation4], 0  ;;  %s13_s8 = sshll.u32 %s118_s0, 4  ;;  %s99_s9 = smov [#allocation2]   ;;  %s14_s8 = int_to_ptr.hbm [resolvable:$true] %s13_s8 }
   0x2   :  { %s15_s10 = sshll.u32 %s99_s9, 4  ;;  %s16_s10 = int_to_ptr.vmem [resolvable:$true] %s15_s10 }
   0x3   :  { %18 = dma.hbm_to_vmem [thread:$0]  %s14_s8, 128, %s16_s10, [#allocation3]  }
   0x4   :  { %95 = dma.done.wait [#allocation3], 128  }
   0x5   :  { %96 = vsyncadd [#allocation3], 4294967168  ;;  %v23_v0 = vld [vmem:[#allocation2] sm:$0xff]  ;;  %s100_s11 = smov 1   ;;  %s101_s12 = smov [#allocation5]  }
   0x6   :  { %24 = vrot.lane.b32.xlu0 %v23_v0, %s100_s11  ;;  %s32_s13 = sshll.u32 %s101_s12, 4  ;;  %s34_s16 = sshll.u32 %s119_s1, 4  ;;  %s33_s13 = int_to_ptr.vmem [resolvable:$true] %s32_s13  ;;  %s35_s16 = int_to_ptr.hbm [resolvable:$true] %s34_s16 }
  0x78   :  { %v25_v1 = vpop.permute.xlu0 %24 }
  0x79   :  { %26 = vst [vmem:[#allocation5] sm:$0xff] %v25_v1 }
  0x7a   :  { %37 = dma.vmem_to_hbm [thread:$0]  %s33_s13, 128, %s35_s16, [#allocation4]  }
  0x7b   :  { %97 = dma.done.wait [#allocation4], 128  }
  0x7c   :  { %98 = vsyncadd [#allocation4], 4294967168 }
  0x7d   :  { %42 = vsyncpa [#allocation3], 1 }
  0x7e   :  { %43 = vsyncpa [#allocation4], 1 }

</bundles_post_ra>
